<compile_context>
chip_gen: v7x
topology: tpu7x:2x2x1
jax: 0.10.0
libtpu: 0.0.40
codegen_flags: <defaults>
</compile_context>

<pallas_src>
import jax
import jax.numpy as jnp
from jax.experimental import pallas as pl
from jax.experimental.pallas import tpu as pltpu


def _slew_rate_cost_kernel(tau_t_ref, w_half_ref, c_ref, o_ref):
    """One batch tile, batch along lanes.

    tau_t_ref : (dp, TB)   current batch tile, lane-major in batch
    w_half_ref: (dp, dp)   0.5 * fused quadratic weight (VMEM resident)
    c_ref     : (dp, 1)    fused linear weight (VMEM resident)
    o_ref     : (1, 1, TB) per-column scalar cost, lane-dense
    """
    tau_t = tau_t_ref[...]                                        # (dp, TB) f32
    y = jnp.dot(w_half_ref[...], tau_t,
                preferred_element_type=jnp.float32)               # (dp, TB) MXU
    y = y + c_ref[...]                                            # lane-broadcast add
    # cost[b] = sum_i tau_t[i,b] * (0.5*W tau[b] + c)_i = 0.5 tau^T W tau + c^T tau
    o_ref[0] = jnp.sum(tau_t * y, axis=0, keepdims=True)          # (1, TB) lane-dense


def slew_rate_cost(tau, C, c, slew_C, n_ctrl):
    """Pallas forward of SlewRateCost. Returns per-batch scalar cost, shape (B,)."""
    B, d_tau = tau.shape
    d_true = d_tau - n_ctrl
    assert C.shape == (d_true, d_true)

    # --- Fuse the two quadratic forms + linear term in the wrapper (cheap, O(d^2)).
    W = slew_C[0].astype(jnp.float32)
    W = W.at[n_ctrl:, n_ctrl:].add(C.astype(jnp.float32))         # (d_tau, d_tau)
    w_half = 0.5 * W
    c_pad = jnp.concatenate(
        [jnp.zeros((n_ctrl,), jnp.float32),
         c.reshape(-1).astype(jnp.float32)]).reshape(d_tau, 1)    # (d_tau, 1)

    # --- Pad feature dim to a sublane multiple (8): aligned tiles, zero padding
    #     contributes nothing to the matmul or the reduction.
    dp = ((d_tau + 7) // 8) * 8
    if dp != d_tau:
        w_half = jnp.zeros((dp, dp), jnp.float32).at[:d_tau, :d_tau].set(w_half)
        c_pad = jnp.zeros((dp, 1), jnp.float32).at[:d_tau, :].set(c_pad)

    # --- Batch tiling: batch along lanes, padded to a multiple of TB (TB % 128 == 0).
    B_pad128 = ((B + 127) // 128) * 128
    TB = min(2048, B_pad128)                 # per-tile VMEM = dp*TB*4 B (tiny); big tiles
    B_pad = ((B + TB - 1) // TB) * TB
    num_tiles = B_pad // TB

    tau_t = jnp.zeros((dp, B_pad), jnp.float32)
    tau_t = tau_t.at[:d_tau, :B].set(tau.astype(jnp.float32).T)   # pad cols give cost 0

    out = pl.pallas_call(
        _slew_rate_cost_kernel,
        out_shape=jax.ShapeDtypeStruct((num_tiles, 1, TB), jnp.float32),
        grid=(num_tiles,),
        in_specs=[
            pl.BlockSpec((dp, TB), lambda i: (0, i)),             # streamed tau tile
            pl.BlockSpec((dp, dp), lambda i: (0, 0)),             # resident weights
            pl.BlockSpec((dp, 1), lambda i: (0, 0)),              # resident linear term
        ],
        out_specs=pl.BlockSpec((1, 1, TB), lambda i: (i, 0, 0)),
        compiler_params=pltpu.CompilerParams(
            dimension_semantics=("parallel",)),                   # shard across TCs (v7x)
    )(tau_t, w_half, c_pad)

    return out.reshape(B_pad)[:B]


def _reference(tau, C, c, slew_C, n_ctrl):
    true_tau = tau[:, n_ctrl:]
    true_cost = 0.5 * jnp.einsum("bi,ij,bj->b", true_tau, C, true_tau) \
        + jnp.einsum("bi,i->b", true_tau, c)
    slew_cost = 0.5 * jnp.einsum("bi,ij,bj->b", tau, slew_C[0], tau)
    return true_cost + slew_cost


if __name__ == "__main__":
    # Small, module-consistent shapes.
    B = 8
    n_state = 8
    n_ctrl = 4
    d_true = n_state + n_ctrl          # dim seen by the wrapped cost
    d_tau = n_ctrl + d_true            # prev-control slot + [x; u]
    T = 5                              # slew_C horizon (only slew_C[0] is used)

    key = jax.random.PRNGKey(0)
    k_tau, k_C, k_c, k_S = jax.random.split(key, 4)

    tau = jax.random.normal(k_tau, (B, d_tau), dtype=jnp.float32)

    # Deterministic synthetic parameters (PSD-ish quadratic weights).
    A = jax.random.normal(k_C, (d_true, d_true), dtype=jnp.float32)
    C = A @ A.T / d_true + 0.1 * jnp.eye(d_true, dtype=jnp.float32)
    c = jax.random.normal(k_c, (d_true,), dtype=jnp.float32)
    Sbase = jax.random.normal(k_S, (d_tau, d_tau), dtype=jnp.float32)
    slew0 = Sbase @ Sbase.T / d_tau + 0.1 * jnp.eye(d_tau, dtype=jnp.float32)
    slew_C = jnp.broadcast_to(slew0, (T, d_tau, d_tau))

    out = slew_rate_cost(tau, C, c, slew_C, n_ctrl)
    out = jax.block_until_ready(out)

    ref = _reference(tau, C, c, slew_C, n_ctrl)
    assert out.shape == (B,)
    assert jnp.allclose(out, ref, rtol=1e-5, atol=1e-5), (out, ref)

    print("KERNEL_OK")

    # TODO(synk): grad_input raises NotImplementedError in the PyTorch module; not implemented.
</pallas_src>

<mosaic_0001>
module attributes {stable_mosaic.version = 11 : i64} {
  func.func @_slew_rate_cost_kernel(%arg0: i32, %arg1: memref<16x128xf32, #tpu.memory_space<vmem>>, %arg2: memref<16x16xf32, #tpu.memory_space<vmem>>, %arg3: memref<16x1xf32, #tpu.memory_space<vmem>>, %arg4: memref<1x1x128xf32, #tpu.memory_space<vmem>>) attributes {dimension_semantics = [#tpu.dimension_semantics<parallel>], iteration_bounds = array<i64: 1>, scalar_prefetch = 0 : i64, scratch_operands = 0 : i64, tpu.core_type = #tpu.core_type<tc>, window_params = [{transform_indices = @transform_0, window_bounds = array<i64: 16, 128>}, {pipeline_mode = #tpu.pipeline_mode<synchronous>, transform_indices = @transform_1, window_bounds = array<i64: 16, 16>}, {pipeline_mode = #tpu.pipeline_mode<synchronous>, transform_indices = @transform_2, window_bounds = array<i64: 16, 1>}, {transform_indices = @transform_3, window_bounds = array<i64: 1, 1, 128>}]} {
    %c0 = arith.constant 0 : index
    %c0_0 = arith.constant 0 : index
    %0 = vector.load %arg1[%c0, %c0_0] : memref<16x128xf32, #tpu.memory_space<vmem>>, vector<16x128xf32>
    %c0_1 = arith.constant 0 : index
    %c0_2 = arith.constant 0 : index
    %1 = vector.load %arg2[%c0_1, %c0_2] : memref<16x16xf32, #tpu.memory_space<vmem>>, vector<16x16xf32>
    %cst = arith.constant dense<0.000000e+00> : vector<16x128xf32>
    %2 = tpu.matmul %1, %0, %cst {dimension_numbers = #tpu.dot_dimension_numbers<[1], [0], [0], [1], [0, 0, 1, 1], [], []>} : vector<16x16xf32>, vector<16x128xf32>, vector<16x128xf32> -> vector<16x128xf32>
    %c0_3 = arith.constant 0 : index
    %c0_4 = arith.constant 0 : index
    %3 = vector.load %arg3[%c0_3, %c0_4] : memref<16x1xf32, #tpu.memory_space<vmem>>, vector<16x1xf32>
    %4 = vector.broadcast %3 : vector<16x1xf32> to vector<16x128xf32>
    %5 = arith.addf %2, %4 : vector<16x128xf32>
    %6 = arith.mulf %0, %5 : vector<16x128xf32>
    %cst_5 = arith.constant dense<0.000000e+00> : vector<128xf32>
    %7 = vector.multi_reduction <add>, %6, %cst_5 [0] : vector<16x128xf32> to vector<128xf32>
    %8 = vector.shape_cast %7 : vector<128xf32> to vector<1x128xf32>
    %c0_6 = arith.constant 0 : index
    %c0_7 = arith.constant 0 : index
    %c0_8 = arith.constant 0 : index
    %9 = vector.load %arg4[%c0_6, %c0_7, %c0_8] : memref<1x1x128xf32, #tpu.memory_space<vmem>>, vector<1x1x128xf32>
    %10 = vector.shape_cast %9 : vector<1x1x128xf32> to vector<1x128xf32>
    %11 = vector.shape_cast %8 : vector<1x128xf32> to vector<1x1x128xf32>
    tpu.vector_store %arg4[%c0_6, %c0_7, %c0_8], %11 {strides = array<i32>} : memref<1x1x128xf32, #tpu.memory_space<vmem>>, vector<1x1x128xf32>,
    return
  }
  func.func @transform_0(%arg0: i32) -> (i32, i32) {
    %c0_i32 = arith.constant 0 : i32
    %c0_i32_0 = arith.constant 0 : i32
    return %c0_i32, %arg0 : i32, i32
  }
  func.func @transform_1(%arg0: i32) -> (i32, i32) {
    %c0_i32 = arith.constant 0 : i32
    %c0_i32_0 = arith.constant 0 : i32
    %c0_i32_1 = arith.constant 0 : i32
    return %c0_i32, %c0_i32_0 : i32, i32
  }
  func.func @transform_2(%arg0: i32) -> (i32, i32) {
    %c0_i32 = arith.constant 0 : i32
    %c0_i32_0 = arith.constant 0 : i32
    %c0_i32_1 = arith.constant 0 : i32
    return %c0_i32, %c0_i32_0 : i32, i32
  }
  func.func @transform_3(%arg0: i32) -> (i32, i32, i32) {
    %c0_i32 = arith.constant 0 : i32
    %c0_i32_0 = arith.constant 0 : i32
    %c0_i32_1 = arith.constant 0 : i32
    return %arg0, %c0_i32, %c0_i32_0 : i32, i32, i32
  }
}

</mosaic_0001>

<bundles_post_ra>
// kernel: tpu_custom_call.1
= control target key start
LH: loop header
LB: loop body
LE: loop exit
PB: predicated region body
PF: predicated region fallthrough
CT: control target
= control target key end

     0   :  { %8 = vsyncpa [#allocation3], 0  ;;  %s284_s0 = inlined_call_operand.vmem [shape: f32[16,128], index: 0, kind: input, shape index: {}]   ;;  %s285_s1 = inlined_call_operand.hbm [shape: f32[16,16], index: 1, kind: input, shape index: {}]   ;;  %s286_s2 = inlined_call_operand.vmem [shape: f32[16,1], index: 2, kind: input, shape index: {}]   ;;  %s287_s3 = inlined_call_operand.hbm [shape: f32[1,1,128], index: 3, kind: output, shape index: {}]  }
   0x1   :  { %9 = vsyncpa [#allocation4], 0  ;;  %s223_s12 = smov [#allocation2]   ;;  %s175_s16 = scalar_lea.hbm %s285_s1, 256 }
   0x2   :  { %s17_s13 = sshll.u32 %s223_s12, 4  ;;  %p176_p0 = scmp.ne.s32.totalorder %s285_s1, %s175_s16  ;;  %s18_s13 = int_to_ptr.vmem [resolvable:$true] %s17_s13 }
   0x3   :  { %p179_p1 = scmp.lt.u32.totalorder %s175_s16, %s285_s1 }
   0x5   :  { %p181_p2 = pnand %p179_p1, %p176_p0 }
   0x7   :  { %184 = shalt.err (!%p181_p2)
}
   0x8   :  { %s185_s21 = scalar_lea.vmem %s18_s13, 256  ;;  %p190_p4 = scmp.lt.s32.totalorder %s18_s13, %s18_s13 }
   0x9   :  { %p186_p3 = scmp.ne.s32.totalorder %s18_s13, %s185_s21  ;;  %p191_p5 = scmp.lt.s32.totalorder %s185_s21, %s185_s21 }
   0xb   :  { %p192_p6 = por %p191_p5, %p190_p4 }
   0xd   :  { %p193_p7 = pnand %p192_p6, %p186_p3 }
   0xf   :  { %196 = shalt.err (!%p193_p7)
}
  0x10   :  { %s224_s22 = smov 128   ;;  %s225_s23 = smov 8  }
  0x11   :  { %23 = dma.hbm_to_vmem [thread:$0]  %s285_s1, 256, %s18_s13, [#allocation3], %s224_s22, %s224_s22, %s225_s23  }
  0x12   :  { %219 = dma.done.wait [#allocation3], 256  }
  0x13   :  { %220 = vsyncadd [#allocation3], 4294967040  ;;  %v226_v0 = vmov 0   ;;  %vm45_vm0 = vcmask 130048   ;;  %v29_v1 = vld [vmem:[%s284_s0] sm:$0xff]  ;;  %v30_v2 = vld [vmem:[%s284_s0 + $0x8] sm:$0xff] }
  0x14   :  { %174 = vset.pattern.permute.xlu0 %v226_v0  ;;  %v31_v3 = vld [vmem:[#allocation2] sm:$0xff]  ;;  %v165_v4 = vpack.c.bf16 %v30_v2, %v29_v1  ;;  %v34_v6 = vld [vmem:[%s286_s2 + $0x8] sm:$0xff]  ;;  %s227_s0 = smov [#allocation5]  }
  0x15   :  { %162 = vmatprep.mubr.msk.f32.mxu0 %vm45_vm0, %v31_v3  ;;  %v33_v5 = vld [vmem:[%s286_s2] sm:$0xff]  ;;  %v32_v7 = vld [vmem:[#allocation2 + $0x8] sm:$0xff]  ;;  %s143_s6 = sshll.u32 %s227_s0, 4  ;;  %s144_s6 = int_to_ptr.vmem [resolvable:$true] %s143_s6 }
  0x16   :  { %37 = vperm.xlu0 %174, %v33_v5   ;;  %166 = vmatprep.subr.bf16.mxu0 %v165_v4  ;;  %s197_s2 = scalar_lea.vmem %s144_s6, 16  ;;  %s201_s7 = scalar_lea.vmem %s144_s6, 32 }
  0x17   :  { %168 = vmatpush3.bf16.msra.mxu0 %v165_v4  ;;  %p198_p8 = scmp.ne.s32.totalorder %s144_s6, %s197_s2  ;;  %p202_p9 = scmp.lt.s32.totalorder %s144_s6, %s144_s6 }
  0x18   :  { %p203_p10 = scmp.lt.s32.totalorder %s201_s7, %s197_s2 }
  0x1a   :  { %42 = vperm.xlu0 %174, %v34_v6   ;;  %163 = vmatmul.mubr.msk.f32.vlgmr.msra.gmra.mrb[0].mxu0 %vm45_vm0, %v32_v7  ;;  %p204_p11 = por %p203_p10, %p202_p9 }
  0x1c   :  { %p205_p12 = pnand %p204_p11, %p198_p8 }
  0x95   :  { %v38_v8 = vpop.permute.xlu0 %37 }
  0x99   :  { %v43_v9 = vpop.permute.xlu0 %42 }
  0xed   :  { %v164_v10 = vpop.f32.mrb[0].mxu0 }
  0xee   :  { %v124_v11 = vadd.f32 %v164_v10, %v43_v9  ;;  %v118_v12 = vpop.f32.mrb[1].mxu0 }
  0xef   :  { %v119_v13 = vadd.f32 %v118_v12, %v38_v8 }
  0xf0   :  { %v128_v14 = vmul.f32 %v124_v11, %v30_v2 }
  0xf1   :  { %v127_v15 = vmul.f32 %v119_v13, %v29_v1 }
  0xf3   :  { %v129_v16 = vadd.f32 %v128_v14, %v127_v15 }
  0xf5   :  { %v130_v17 = vrot.slane %v129_v16, 4 }
  0xf7   :  { %v131_v18 = vadd.f32 %v130_v17, %v129_v16 }
  0xf9   :  { %v132_v19 = vrot.slane %v131_v18, 2 }
  0xfb   :  { %v133_v20 = vadd.f32 %v132_v19, %v131_v18 }
  0xfd   :  { %v134_v21 = vrot.slane %v133_v20, 1 }
  0xff   :  { %v135_v22 = vadd.f32 %v134_v21, %v133_v20 }
 0x101   :  { %136 = vst [vmem:[#allocation5] sm:$0x1] %v135_v22 }
 0x102   :  { %208 = shalt.err (!%p205_p12)
}
 0x103   :  { %s209_s10 = scalar_lea.hbm %s287_s3, 16 }
 0x104   :  { %p210_p13 = scmp.ne.s32.totalorder %s287_s3, %s209_s10  ;;  %p213_p0 = scmp.lt.u32.totalorder %s209_s10, %s287_s3 }
 0x106   :  { %p215_p1 = pnand %p213_p0, %p210_p13 }
 0x108   :  { %218 = shalt.err (!%p215_p1)
}
 0x109   :  { %146 = dma.vmem_to_hbm [thread:$0]  %s144_s6, 16, %s287_s3, [#allocation4]  }
 0x10a   :  { %221 = dma.done.wait [#allocation4], 16  }
 0x10b   :  { %222 = vsyncadd [#allocation4], 4294967280 }
 0x10c   :  { %150 = vsyncpa [#allocation3], 1 }
 0x10d   :  { %151 = vsyncpa [#allocation4], 1 }

</bundles_post_ra>
